<compile_context>
chip_gen: v6e
topology: v6e:2x2x1
jax: 0.10.0
libtpu: 0.0.40
codegen_flags: <defaults>
</compile_context>

<pallas_src>
import functools

import jax
import jax.numpy as jnp
import numpy as np
from jax.experimental import pallas as pl
from jax.experimental.pallas import tpu as pltpu


def _round_up(x, m):
    return ((x + m - 1) // m) * m


def _vmem_limit(bytes_needed):
    # Real requirement + headroom for compiler-internal scratch; no blanket cap
    # so oversized configs fail loudly rather than silently spill (v7x: 64 MiB/TC).
    return int(max(bytes_needed + (8 << 20), 32 << 20))


def _pick_row_tile(M, tmax):
    """Largest multiple-of-8 tile <= tmax that divides M (M is a multiple of 8)."""
    t = min(tmax, M)
    while M % t:
        t -= 8
    return t


def _pick_head_group(H, Dh):
    """Largest divisor of H with G*Dh <= ~128 lanes (lane-dense blocks)."""
    g = max(1, min(H, 128 // max(Dh, 1)))
    while H % g:
        g -= 1
    return g


# ---------------------------------------------------------------------------
# Linear (x @ W [+ b]), token-tiled, weights resident, f32 accumulation.
# ---------------------------------------------------------------------------
def _linear_bias_kernel(x_ref, w_ref, b_ref, o_ref):
    acc = jnp.dot(x_ref[...], w_ref[...], preferred_element_type=jnp.float32)
    o_ref[...] = (acc + b_ref[...]).astype(o_ref.dtype)


def _linear_nobias_kernel(x_ref, w_ref, o_ref):
    acc = jnp.dot(x_ref[...], w_ref[...], preferred_element_type=jnp.float32)
    o_ref[...] = acc.astype(o_ref.dtype)


def _linear_pallas(x, w, b, *, tm=512, out_dtype=None):
    """x: (M, C_in), w: (C_in, C_out), b: (1, C_out) f32 or None -> (M, C_out)."""
    M, C_in = x.shape
    C_out = w.shape[1]
    out_dtype = x.dtype if out_dtype is None else out_dtype
    tm = _pick_row_tile(M, tm)

    in_specs = [
        pl.BlockSpec((tm, C_in), lambda i: (i, 0)),      # activation tile
        pl.BlockSpec((C_in, C_out), lambda i: (0, 0)),   # weight (resident)
    ]
    args = [x, w]
    if b is not None:                                    # skip bias path if None
        in_specs.append(pl.BlockSpec((1, C_out), lambda i: (0, 0)))
        args.append(b)
        kernel = _linear_bias_kernel
    else:
        kernel = _linear_nobias_kernel

    out_itemsize = jnp.dtype(out_dtype).itemsize
    bytes_needed = (2 * tm * C_in * x.dtype.itemsize     # double-buffered x tiles
                    + 2 * tm * C_out * out_itemsize      # double-buffered out tiles
                    + 2 * C_in * C_out * w.dtype.itemsize  # weight buffers
                    + 2 * C_out * 4)                     # bias

    return pl.pallas_call(
        kernel,
        out_shape=jax.ShapeDtypeStruct((M, C_out), out_dtype),
        grid_spec=pltpu.PrefetchScalarGridSpec(
            num_scalar_prefetch=0,
            grid=(M // tm,),
            in_specs=in_specs,
            out_specs=pl.BlockSpec((tm, C_out), lambda i: (i, 0)),
        ),
        compiler_params=pltpu.CompilerParams(
            dimension_semantics=("parallel",),
            vmem_limit_bytes=_vmem_limit(bytes_needed),
        ),
    )(*args)


# ---------------------------------------------------------------------------
# Flash attention: grouped heads, online softmax over kv tiles.
# Inputs/outputs are 2-D column slabs of the qkv projection -> no transposes.
# ---------------------------------------------------------------------------
def _flash_kernel(q_ref, k_ref, v_ref, o_ref, m_sc, l_sc, acc_sc, *,
                  scale, G, Dh, seq_len, tk, need_mask):
    ki = pl.program_id(3)

    @pl.when(ki == 0)
    def _():
        m_sc[...] = jnp.full_like(m_sc, -jnp.inf)
        l_sc[...] = jnp.zeros_like(l_sc)
        acc_sc[...] = jnp.zeros_like(acc_sc)

    q = q_ref[...] * scale          # fold scale into q (tq x G*Dh, once per step)
    k = k_ref[...]
    v = v_ref[...]

    if need_mask:                   # static: only when the sequence was padded
        col = ki * tk + jax.lax.broadcasted_iota(jnp.int32, (1, tk), 1)
        bias = jnp.where(col < seq_len, 0.0, -jnp.inf).astype(jnp.float32)

    dn_qk = (((1,), (1,)), ((), ()))   # q (tq,Dh) . k (tk,Dh), contract last dims
    dn_pv = (((1,), (0,)), ((), ()))   # p (tq,tk) . v (tk,Dh)

    for g in range(G):                 # static unroll over heads in this group
        cs = slice(g * Dh, (g + 1) * Dh)
        s = jax.lax.dot_general(q[:, cs], k[:, cs], dn_qk,
                                preferred_element_type=jnp.float32)  # (tq, tk)
        if need_mask:
            s = s + bias               # (1, tk) additive -inf mask (broadcast)

        m_prev = m_sc[:, g:g + 1]
        m_new = jnp.maximum(m_prev, s.max(axis=-1, keepdims=True))
        alpha = jnp.exp(m_prev - m_new)
        p = jnp.exp(s - m_new)
        l_sc[:, g:g + 1] = alpha * l_sc[:, g:g + 1] + p.sum(axis=-1, keepdims=True)
        acc_sc[:, cs] = alpha * acc_sc[:, cs] + jax.lax.dot_general(
            p.astype(v.dtype), v[:, cs], dn_pv, preferred_element_type=jnp.float32)
        m_sc[:, g:g + 1] = m_new

    @pl.when(ki == pl.num_programs(3) - 1)
    def _():
        for g in range(G):
            cs = slice(g * Dh, (g + 1) * Dh)
            inv = pl.reciprocal(l_sc[:, g:g + 1], approx=True)
            o_ref[:, cs] = (acc_sc[:, cs] * inv).astype(o_ref.dtype)


def _flash_attention(qkv, *, B, Np, H, Dh, scale, seq_len, t):
    """qkv: (B*Np, 3*H*Dh) laid out [q(h,d) | k(h,d) | v(h,d)] -> (B*Np, H*Dh)."""
    C = H * Dh
    M = B * Np
    G = _pick_head_group(H, Dh)
    HG = H // G
    W = G * Dh
    n_tiles = Np // t
    need_mask = Np != seq_len

    def q_map(b, hg, qi, ki): return (b * n_tiles + qi, hg)
    def k_map(b, hg, qi, ki): return (b * n_tiles + ki, HG + hg)
    def v_map(b, hg, qi, ki): return (b * n_tiles + ki, 2 * HG + hg)
    def o_map(b, hg, qi, ki): return (b * n_tiles + qi, hg)

    itm = qkv.dtype.itemsize
    bytes_needed = (4 * 2 * t * W * itm            # q,k,v,out double-buffered tiles
                    + 2 * t * G * 4 + t * W * 4)   # f32 m/l/acc scratch

    kernel = functools.partial(_flash_kernel, scale=scale, G=G, Dh=Dh,
                               seq_len=seq_len, tk=t, need_mask=need_mask)

    return pl.pallas_call(
        kernel,
        out_shape=jax.ShapeDtypeStruct((M, C), qkv.dtype),
        grid_spec=pltpu.PrefetchScalarGridSpec(
            num_scalar_prefetch=0,
            grid=(B, HG, n_tiles, n_tiles),
            in_specs=[
                pl.BlockSpec((t, W), q_map),
                pl.BlockSpec((t, W), k_map),
                pl.BlockSpec((t, W), v_map),
            ],
            out_specs=pl.BlockSpec((t, W), o_map),
            scratch_shapes=[
                pltpu.VMEM((t, G), jnp.float32),    # running max per head
                pltpu.VMEM((t, G), jnp.float32),    # running sum per head
                pltpu.VMEM((t, W), jnp.float32),    # f32 output accumulator
            ],
        ),
        compiler_params=pltpu.CompilerParams(
            dimension_semantics=("parallel", "parallel", "parallel", "arbitrary"),
            vmem_limit_bytes=_vmem_limit(bytes_needed),
        ),
    )(qkv, qkv, qkv)


# ---------------------------------------------------------------------------
# Full Attention forward.
# ---------------------------------------------------------------------------
def attention_pallas(x, w_qkv, b_qkv, w_proj, b_proj, *, num_heads,
                     block=128, tm=512, compute_dtype=jnp.bfloat16):
    """x: (B, N, C); w_qkv: (C, 3C); w_proj: (C, C); returns (B, N, C) float32."""
    B, N, C = x.shape
    H = num_heads
    assert C % H == 0, "dim should be divisible by num_heads"
    Dh = C // H
    scale = Dh ** -0.5

    t = min(block, _round_up(N, 8))
    Np = _round_up(N, t)

    xd = x.astype(compute_dtype)
    if Np != N:                           # single pad of the activations
        xd = jnp.pad(xd, ((0, 0), (0, Np - N), (0, 0)))
    xd = xd.reshape(B * Np, C)            # free reshape

    wq = w_qkv.astype(compute_dtype)
    wp = w_proj.astype(compute_dtype)
    bq = None if b_qkv is None else b_qkv.astype(jnp.float32).reshape(1, -1)
    bp = None if b_proj is None else b_proj.astype(jnp.float32).reshape(1, -1)

    qkv = _linear_pallas(xd, wq, bq, tm=tm, out_dtype=compute_dtype)   # (B*Np, 3C)
    o = _flash_attention(qkv, B=B, Np=Np, H=H, Dh=Dh, scale=scale,
                         seq_len=N, t=t)                               # (B*Np, C)
    y = _linear_pallas(o, wp, bp, tm=tm, out_dtype=jnp.float32)        # (B*Np, C)
    y = y.reshape(B, Np, C)
    return y[:, :N, :]
    # TODO(synk): attn_drop/proj_drop (p=0.0 default) and qk_norm LayerNorm
    # (disabled by default) are identities and intentionally omitted.


# ---------------------------------------------------------------------------
# Pure-JAX f32 reference and deterministic tests.
# ---------------------------------------------------------------------------
def _attention_ref(x, w_qkv, b_qkv, w_proj, b_proj, num_heads):
    B, N, C = x.shape
    Dh = C // num_heads
    qkv = jnp.einsum("bnc,cd->bnd", x, w_qkv)
    if b_qkv is not None:
        qkv = qkv + b_qkv.reshape(1, 1, -1)
    qkv = qkv.reshape(B, N, 3, num_heads, Dh).transpose(2, 0, 3, 1, 4)
    q, k, v = qkv[0], qkv[1], qkv[2]
    attn = jnp.einsum("bhqd,bhkd->bhqk", q, k) * (Dh ** -0.5)
    attn = jax.nn.softmax(attn, axis=-1)
    o = jnp.einsum("bhqk,bhkd->bhqd", attn, v)
    o = o.transpose(0, 2, 1, 3).reshape(B, N, C)
    out = jnp.einsum("bnc,cd->bnd", o, w_proj)
    if b_proj is not None:
        out = out + b_proj.reshape(1, 1, -1)
    return out


def _run_case(key, *, B, N, C, num_heads, qkv_bias, block):
    kx, kq, kqb, kpw, kpb = jax.random.split(key, 5)
    bound = 1.0 / np.sqrt(C)
    x = jax.random.normal(kx, (B, N, C), jnp.float32)
    w_qkv = jax.random.uniform(kq, (C, 3 * C), jnp.float32, -bound, bound)
    b_qkv = (jax.random.uniform(kqb, (3 * C,), jnp.float32, -bound, bound)
             if qkv_bias else None)
    w_proj = jax.random.uniform(kpw, (C, C), jnp.float32, -bound, bound)
    b_proj = jax.random.uniform(kpb, (C,), jnp.float32, -bound, bound)

    y = attention_pallas(x, w_qkv, b_qkv, w_proj, b_proj,
                         num_heads=num_heads, block=block)
    y = jax.block_until_ready(y)
    y_ref = _attention_ref(x, w_qkv, b_qkv, w_proj, b_proj, num_heads)
    np.testing.assert_allclose(np.asarray(y), np.asarray(y_ref),
                               rtol=3e-2, atol=3e-2)


if __name__ == "__main__":
    key = jax.random.PRNGKey(0)
    k1, k2 = jax.random.split(key)
    # Attention(dim=64, num_heads=8) on x: (B=2, N=8, C=64); no-padding path.
    _run_case(k1, B=2, N=8, C=64, num_heads=8, qkv_bias=False, block=128)
    # Padded / multi-kv-tile / head-grouped path: dim=256, 4 heads (Dh=64 ->
    # 2 heads per 128-lane block), N=12 with tile 8 -> padding + -inf mask.
    _run_case(k2, B=2, N=12, C=256, num_heads=4, qkv_bias=True, block=8)
    print("KERNEL_OK")
</pallas_src>

<mosaic_0001>
module attributes {stable_mosaic.version = 11 : i64} {
  func.func @_linear_nobias_kernel(%arg0: i32, %arg1: memref<16x64xbf16, #tpu.memory_space<vmem>>, %arg2: memref<64x192xbf16, #tpu.memory_space<vmem>>, %arg3: memref<16x192xbf16, #tpu.memory_space<vmem>>) attributes {dimension_semantics = [#tpu.dimension_semantics<parallel>], iteration_bounds = array<i64: 1>, scalar_prefetch = 0 : i64, scratch_operands = 0 : i64, tpu.core_type = #tpu.core_type<tc>, window_params = [{transform_indices = @transform_0, window_bounds = array<i64: 16, 64>}, {pipeline_mode = #tpu.pipeline_mode<synchronous>, transform_indices = @transform_1, window_bounds = array<i64: 64, 192>}, {transform_indices = @transform_2, window_bounds = array<i64: 16, 192>}]} {
    %c0 = arith.constant 0 : index
    %c0_0 = arith.constant 0 : index
    %0 = vector.load %arg1[%c0, %c0_0] : memref<16x64xbf16, #tpu.memory_space<vmem>>, vector<16x64xbf16>
    %c0_1 = arith.constant 0 : index
    %c0_2 = arith.constant 0 : index
    %1 = vector.load %arg2[%c0_1, %c0_2] : memref<64x192xbf16, #tpu.memory_space<vmem>>, vector<64x192xbf16>
    %cst = arith.constant dense<0.000000e+00> : vector<16x192xf32>
    %2 = tpu.matmul %0, %1, %cst {dimension_numbers = #tpu.dot_dimension_numbers<[1], [0], [0], [1], [0, 0, 1, 1], [], []>} : vector<16x64xbf16>, vector<64x192xbf16>, vector<16x192xf32> -> vector<16x192xf32>
    %3 = arith.truncf %2 : vector<16x192xf32> to vector<16x192xbf16>
    %c0_3 = arith.constant 0 : index
    %c0_4 = arith.constant 0 : index
    %4 = vector.load %arg3[%c0_3, %c0_4] : memref<16x192xbf16, #tpu.memory_space<vmem>>, vector<16x192xbf16>
    tpu.vector_store %arg3[%c0_3, %c0_4], %3 {strides = array<i32>} : memref<16x192xbf16, #tpu.memory_space<vmem>>, vector<16x192xbf16>,
    return
  }
  func.func @transform_0(%arg0: i32) -> (i32, i32) {
    %c0_i32 = arith.constant 0 : i32
    %c0_i32_0 = arith.constant 0 : i32
    return %arg0, %c0_i32 : i32, i32
  }
  func.func @transform_1(%arg0: i32) -> (i32, i32) {
    %c0_i32 = arith.constant 0 : i32
    %c0_i32_0 = arith.constant 0 : i32
    %c0_i32_1 = arith.constant 0 : i32
    return %c0_i32, %c0_i32_0 : i32, i32
  }
  func.func @transform_2(%arg0: i32) -> (i32, i32) {
    %c0_i32 = arith.constant 0 : i32
    %c0_i32_0 = arith.constant 0 : i32
    return %arg0, %c0_i32 : i32, i32
  }
}

</mosaic_0001>

<bundles_post_ra>
// kernel: tpu_custom_call.1
= control target key start
LH: loop header
LB: loop body
LE: loop exit
PB: predicated region body
PF: predicated region fallthrough
CT: control target
= control target key end

     0   :  { %7 = vsyncpa [#allocation3], 0  ;;  %s317_s0 = inlined_call_operand.hbm [shape: bf16[16,64], index: 0, kind: input, shape index: {}]   ;;  %s318_s1 = inlined_call_operand.hbm [shape: bf16[64,192], index: 1, kind: input, shape index: {}]   ;;  %s319_s2 = inlined_call_operand.hbm [shape: bf16[16,192], index: 2, kind: output, shape index: {}]  }
   0x1   :  { %8 = vsyncpa [#allocation6], 0 }
   0x2   :  { %9 = vsyncpa [#allocation4], 0  ;;  %s279_s9 = smov [#allocation2]  }
   0x3   :  { %s15_s10 = sshll.u32 %s279_s9, 4  ;;  %s16_s10 = int_to_ptr.vmem [resolvable:$true] %s15_s10 }
   0x4   :  { %s221_s11 = scalar_lea.vmem %s16_s10, 128  ;;  %p226_p1 = scmp.lt.s32.totalorder %s16_s10, %s16_s10 }
   0x5   :  { %p222_p0 = scmp.ne.s32.totalorder %s16_s10, %s221_s11  ;;  %p227_p2 = scmp.lt.s32.totalorder %s221_s11, %s221_s11 }
   0x7   :  { %p228_p3 = por %p227_p2, %p226_p1 }
   0x9   :  { %p229_p4 = pnand %p228_p3, %p222_p0 }
   0xb   :  { %232 = shalt.err (!%p229_p4)
}
   0xc   :  { %s280_s12 = smov 64   ;;  %s281_s13 = smov 4  }
   0xd   :  { %21 = dma.hbm_to_vmem [thread:$0]  %s317_s0, 128, %s16_s10, [#allocation3], %s280_s12, %s280_s12, %s281_s13  }
   0xe   :  { %s282_s16 = smov [#allocation5]  }
   0xf   :  { %s27_s17 = sshll.u32 %s282_s16, 4  ;;  %s28_s17 = int_to_ptr.vmem [resolvable:$true] %s27_s17 }
  0x10   :  { %s241_s18 = scalar_lea.vmem %s28_s17, 1024  ;;  %p246_p6 = scmp.lt.s32.totalorder %s28_s17, %s28_s17 }
  0x11   :  { %p242_p5 = scmp.ne.s32.totalorder %s28_s17, %s241_s18  ;;  %p247_p7 = scmp.lt.s32.totalorder %s241_s18, %s241_s18 }
  0x13   :  { %p248_p8 = por %p247_p7, %p246_p6 }
  0x15   :  { %p249_p9 = pnand %p248_p8, %p242_p5 }
  0x17   :  { %252 = shalt.err (!%p249_p9)
}
  0x18   :  { %s283_s19 = smov 128   ;;  %s284_s20 = smov 8  }
  0x19   :  { %33 = dma.hbm_to_vmem [thread:$0]  %s318_s1, 1024, %s28_s17, [#allocation6], %s283_s19, %s283_s19, %s284_s20  }
  0x1a   :  { %273 = dma.done.wait [#allocation3], 128  }
  0x1b   :  { %274 = vsyncadd [#allocation3], 4294967168 }
  0x1c   :  { %275 = dma.done.wait [#allocation6], 1024  }
  0x1d   :  { %276 = vsyncadd [#allocation6], 4294966272  ;;  %v285_v0 = vmov 0   ;;  %v200_v1 = vld [vmem:[#allocation5 + $0x34] ss:$8 sps:$4 sm:$0xff]   ;;  %vm96_vm0 = vcmask 523264  }
  0x1e   :  { %132 = vmatprep.mubr.bf16.mxu0 %v285_v0  ;;  %v202_v2 = vld [vmem:[#allocation5 + $0x30] ss:$8 sps:$4 sm:$0xff]   ;;  %108 = vmatprep.subr.bf16.mxu0 %v200_v1  ;;  %v203_v3 = vld [vmem:[#allocation5 + $0x24] ss:$8 sps:$4 sm:$0xff]   ;;  %v205_v4 = vld [vmem:[#allocation5 + $0x20] ss:$8 sps:$4 sm:$0xff]  }
  0x1f   :  { %109 = vmatpush1.bf16.msra.mxu0 %v202_v2  ;;  %v206_v5 = vld [vmem:[#allocation5 + $0x14] ss:$8 sps:$4 sm:$0xff]   ;;  %v208_v6 = vld [vmem:[#allocation5 + $0x10] ss:$8 sps:$4 sm:$0xff]   ;;  %v209_v7 = vld [vmem:[#allocation5 + $0x4] ss:$8 sps:$4 sm:$0xff]  }
  0x20   :  { %110 = vmatprep.subr.bf16.mxu0 %v203_v3  ;;  %v211_v8 = vld [vmem:[#allocation5] ss:$8 sps:$4 sm:$0xff]   ;;  %v212_v9 = vld [vmem:[#allocation2] sm:$0xff]   ;;  %vm155_vm1 = vcmask 1043456   ;;  %vm156_vm2 = vcmask 523268   ;;  %s286_s0 = smov [#allocation7]  }
  0x21   :  { %vm157_vm3 = vmor %vm156_vm2, %vm155_vm1  ;;  %s165_s1 = sshll.u32 %s286_s0, 4  ;;  %s166_s1 = int_to_ptr.vmem [resolvable:$true] %s165_s1 }
  0x22   :  { %s253_s23 = scalar_lea.vmem %s166_s1, 256  ;;  %p258_p11 = scmp.lt.s32.totalorder %s166_s1, %s166_s1 }
  0x23   :  { %111 = vmatpush1.bf16.msra.mxu0 %v205_v4  ;;  %p254_p10 = scmp.ne.s32.totalorder %s166_s1, %s253_s23  ;;  %p259_p12 = scmp.lt.s32.totalorder %s253_s23, %s253_s23 }
  0x24   :  { %112 = vmatprep.subr.bf16.mxu0 %v206_v5 }
  0x25   :  { %p260_p13 = por %p259_p12, %p258_p11 }
  0x27   :  { %113 = vmatpush1.bf16.msra.mxu0 %v208_v6  ;;  %p261_p0 = pnand %p260_p13, %p254_p10 }
  0x28   :  { %114 = vmatprep.subr.bf16.mxu0 %v209_v7 }
  0x2b   :  { %115 = vmatpush1.bf16.msra.mxu0 %v211_v8 }
  0x2e   :  { %187 = vmatmul.mubr.msk.bf16.vlgmr.msra.gmra.mxu0 %vm96_vm0, %v212_v9 }
  0xee   :  { %v134_v10 = vpop.f32.mrf.mxu0 }
  0xf0   :  { %v136_v11 = vpop.f32.mrf.mxu0 }
  0xf1   :  { %v190_v12 = vpack.c.bf16 %v136_v11, %v134_v10 }
  0xf2   :  { %v138_v13 = vpop.f32.mrf.mxu0 }
  0xf3   :  { %158 = vst.msk [vmem:[#allocation7] sm:$0xff] %vm157_vm3, %v190_v12 }
  0xf4   :  { %v140_v14 = vpop.f32.mrf.mxu0 }
  0xf5   :  { %v191_v15 = vpack.c.bf16 %v140_v14, %v138_v13 }
  0xf7   :  { %159 = vst.msk [vmem:[#allocation7 + $0x8] sm:$0xff] %vm157_vm3, %v191_v15 }
  0xf8   :  { %264 = shalt.err (!%p261_p0)
}
  0xf9   :  { %171 = dma.vmem_to_hbm [thread:$0]  %s166_s1, 256, %s319_s2, [#allocation4], %s283_s19, %s283_s19, %s284_s20  }
  0xfa   :  { %277 = dma.done.wait [#allocation4], 256  }
  0xfb   :  { %278 = vsyncadd [#allocation4], 4294967040 }
  0xfc   :  { %175 = vsyncpa [#allocation3], 1 }
  0xfd   :  { %176 = vsyncpa [#allocation6], 1 }
  0xfe   :  { %177 = vsyncpa [#allocation4], 1 }

</bundles_post_ra>
